<compile_context>
chip_gen: v6e
topology: v6e:2x2x1
jax: 0.10.0
libtpu: 0.0.40
codegen_flags: <defaults>
</compile_context>

<pallas_src>
import jax
import jax.numpy as jnp
from jax.experimental import pallas as pl
from jax.experimental.pallas import tpu as pltpu


def _elu(x):
    # F.elu with alpha=1.0: x if x > 0 else exp(x) - 1
    return jnp.where(x > 0, x, jnp.exp(x) - 1.0)


def actor_critic_kernel(x_ref, w1_ref, b1_ref, w2_ref, b2_ref,
                        wh_ref, bh_ref, out_ref):
    x = x_ref[...]                                                      # [TB, 4]

    # Linear(4, 32) + ELU
    h = jnp.dot(x, w1_ref[...], preferred_element_type=jnp.float32)    # [TB, 32]
    h = _elu(h + b1_ref[...])

    # Linear(32, 32) + ELU
    h = jnp.dot(h, w2_ref[...], preferred_element_type=jnp.float32)    # [TB, 32]
    h = _elu(h + b2_ref[...])

    # Fused heads: single Linear(32, 4); cols 0:2 = action logits, 2:4 = values
    heads = jnp.dot(h, wh_ref[...], preferred_element_type=jnp.float32)
    heads = heads + bh_ref[...]                                         # [TB, 4]
    logits = heads[:, 0:2]
    vals = heads[:, 2:4]

    # Exact softmax over the 2-class action logits (matches F.softmax / reference).
    m = jnp.max(logits, axis=-1, keepdims=True)
    e = jnp.exp(logits - m)
    denom = jnp.sum(e, axis=-1, keepdims=True)
    probs = e * pl.reciprocal(denom, approx=False)

    # Single lane-dense [TB, 4] store (probs | values).
    out_ref[...] = jnp.concatenate([probs, vals], axis=-1)


def _round_up(n, m):
    return ((n + m - 1) // m) * m


def actor_critic_forward(states, params, *, max_tile=512):
    """states: [B, 4] f32.  params: dict of pre-transposed weights / 2-D biases.

    Returns (action_probabilities [B, 2], action_values [B, 2]).
    """
    B = states.shape[0]

    # Fuse the two heads in the wrapper (done once, outside the kernel).
    wh = jnp.concatenate([params["wa"], params["wv"]], axis=1)   # [32, 4]
    bh = jnp.concatenate([params["ba"], params["bv"]], axis=1)   # [1, 4]

    # Batch tile: multiple of 8 (sublane), capped so tiles comfortably fit VMEM
    # even on v7x (64 MiB VMEM). Pad the batch so the grid divides evenly.
    tb = min(max_tile, _round_up(B, 8))
    Bp = _round_up(B, tb)
    states_in = states if Bp == B else jnp.pad(states, ((0, Bp - B), (0, 0)))

    grid = (Bp // tb,)

    def batch_map(i):
        return (i, 0)

    def const_map(i):
        return (0, 0)

    weights = (params["w1"], params["b1"], params["w2"], params["b2"], wh, bh)

    in_specs = [pl.BlockSpec((tb, 4), batch_map)]
    in_specs += [pl.BlockSpec(w.shape, const_map) for w in weights]
    out_specs = pl.BlockSpec((tb, 4), batch_map)

    out = pl.pallas_call(
        actor_critic_kernel,
        grid=grid,
        in_specs=in_specs,
        out_specs=out_specs,
        out_shape=jax.ShapeDtypeStruct((Bp, 4), jnp.float32),
        compiler_params=pltpu.CompilerParams(
            dimension_semantics=("parallel",),
            vmem_limit_bytes=64 * 1024 * 1024,
        ),
    )(states_in, *weights)

    out = out[:B]
    return out[:, 0:2], out[:, 2:4]


def init_params(key):
    """Deterministic synthetic init matching torch.nn.Linear shapes.

    torch Linear(i, o): weight [o, i], bias [o]  ->  stored here as
    w: [i, o] (transposed), b: [1, o].
    """
    def linear(k, fan_in, fan_out):
        kw, kb = jax.random.split(k)
        bound = 1.0 / jnp.sqrt(jnp.float32(fan_in))
        w = jax.random.uniform(kw, (fan_in, fan_out), jnp.float32, -bound, bound)
        b = jax.random.uniform(kb, (1, fan_out), jnp.float32, -bound, bound)
        return w, b

    k1, k2, k3, k4 = jax.random.split(key, 4)
    w1, b1 = linear(k1, 4, 32)    # input_layer
    w2, b2 = linear(k2, 32, 32)   # hidden_layer
    wa, ba = linear(k3, 32, 2)    # action_layer
    wv, bv = linear(k4, 32, 2)    # action_value_layer
    return dict(w1=w1, b1=b1, w2=w2, b2=b2, wa=wa, ba=ba, wv=wv, bv=bv)


def reference_forward(states, p):
    """Pure-JAX reference for a sanity check."""
    h = jax.nn.elu(states @ p["w1"] + p["b1"])
    h = jax.nn.elu(h @ p["w2"] + p["b2"])
    probs = jax.nn.softmax(h @ p["wa"] + p["ba"], axis=-1)
    vals = h @ p["wv"] + p["bv"]
    return probs, vals


if __name__ == "__main__":
    key = jax.random.PRNGKey(0)
    k_params, k_states, k_big = jax.random.split(key, 3)

    params = init_params(k_params)

    # Small case (B=8): single grid step, no padding.
    states = jax.random.normal(k_states, (8, 4), dtype=jnp.float32)
    probs, vals = actor_critic_forward(states, params)
    jax.block_until_ready((probs, vals))

    ref_probs, ref_vals = reference_forward(states, params)
    assert probs.shape == (8, 2) and vals.shape == (8, 2)
    assert jnp.allclose(probs, ref_probs, atol=1e-5, rtol=1e-5)
    assert jnp.allclose(vals, ref_vals, atol=1e-5, rtol=1e-5)
    assert jnp.allclose(jnp.sum(probs, axis=-1), 1.0, atol=1e-5)

    # Larger ragged case: exercises batch padding + multi-step parallel grid.
    big_states = jax.random.normal(k_big, (600, 4), dtype=jnp.float32)
    big_probs, big_vals = actor_critic_forward(big_states, params, max_tile=256)
    jax.block_until_ready((big_probs, big_vals))
    ref_bp, ref_bv = reference_forward(big_states, params)
    assert big_probs.shape == (600, 2) and big_vals.shape == (600, 2)
    assert jnp.allclose(big_probs, ref_bp, atol=1e-5, rtol=1e-5)
    assert jnp.allclose(big_vals, ref_bv, atol=1e-5, rtol=1e-5)

    print("KERNEL_OK")
</pallas_src>

<mosaic_0001>
module attributes {stable_mosaic.version = 11 : i64} {
  func.func @actor_critic_kernel(%arg0: i32, %arg1: memref<8x4xf32, #tpu.memory_space<vmem>>, %arg2: memref<4x32xf32, #tpu.memory_space<vmem>>, %arg3: memref<1x32xf32, #tpu.memory_space<vmem>>, %arg4: memref<32x32xf32, #tpu.memory_space<vmem>>, %arg5: memref<1x32xf32, #tpu.memory_space<vmem>>, %arg6: memref<32x4xf32, #tpu.memory_space<vmem>>, %arg7: memref<1x4xf32, #tpu.memory_space<vmem>>, %arg8: memref<8x4xf32, #tpu.memory_space<vmem>>) attributes {dimension_semantics = [#tpu.dimension_semantics<parallel>], iteration_bounds = array<i64: 1>, scalar_prefetch = 0 : i64, scratch_operands = 0 : i64, tpu.core_type = #tpu.core_type<tc>, window_params = [{transform_indices = @transform_0, window_bounds = array<i64: 8, 4>}, {pipeline_mode = #tpu.pipeline_mode<synchronous>, transform_indices = @transform_1, window_bounds = array<i64: 4, 32>}, {pipeline_mode = #tpu.pipeline_mode<synchronous>, transform_indices = @transform_2, window_bounds = array<i64: 1, 32>}, {pipeline_mode = #tpu.pipeline_mode<synchronous>, transform_indices = @transform_3, window_bounds = array<i64: 32, 32>}, {pipeline_mode = #tpu.pipeline_mode<synchronous>, transform_indices = @transform_4, window_bounds = array<i64: 1, 32>}, {pipeline_mode = #tpu.pipeline_mode<synchronous>, transform_indices = @transform_5, window_bounds = array<i64: 32, 4>}, {pipeline_mode = #tpu.pipeline_mode<synchronous>, transform_indices = @transform_6, window_bounds = array<i64: 1, 4>}, {transform_indices = @transform_7, window_bounds = array<i64: 8, 4>}]} {
    %c0 = arith.constant 0 : index
    %c0_0 = arith.constant 0 : index
    %0 = vector.load %arg1[%c0, %c0_0] : memref<8x4xf32, #tpu.memory_space<vmem>>, vector<8x4xf32>
    %c0_1 = arith.constant 0 : index
    %c0_2 = arith.constant 0 : index
    %1 = vector.load %arg2[%c0_1, %c0_2] : memref<4x32xf32, #tpu.memory_space<vmem>>, vector<4x32xf32>
    %cst = arith.constant dense<0.000000e+00> : vector<8x32xf32>
    %2 = tpu.matmul %0, %1, %cst {dimension_numbers = #tpu.dot_dimension_numbers<[1], [0], [0], [1], [0, 0, 1, 1], [], []>} : vector<8x4xf32>, vector<4x32xf32>, vector<8x32xf32> -> vector<8x32xf32>
    %c0_3 = arith.constant 0 : index
    %c0_4 = arith.constant 0 : index
    %3 = vector.load %arg3[%c0_3, %c0_4] : memref<1x32xf32, #tpu.memory_space<vmem>>, vector<1x32xf32>
    %4 = vector.broadcast %3 : vector<1x32xf32> to vector<8x32xf32>
    %5 = arith.addf %2, %4 : vector<8x32xf32>
    %cst_5 = arith.constant 0.000000e+00 : f32
    %6 = vector.broadcast %cst_5 : f32 to vector<8x32xf32>
    %7 = arith.cmpf ogt, %5, %6 : vector<8x32xf32>
    %8 = math.exp %5 : vector<8x32xf32>
    %cst_6 = arith.constant 1.000000e+00 : f32
    %9 = vector.broadcast %cst_6 : f32 to vector<8x32xf32>
    %10 = arith.subf %8, %9 : vector<8x32xf32>
    %11 = arith.select %7, %5, %10 : vector<8x32xi1>, vector<8x32xf32>
    %c0_7 = arith.constant 0 : index
    %c0_8 = arith.constant 0 : index
    %12 = vector.load %arg4[%c0_7, %c0_8] : memref<32x32xf32, #tpu.memory_space<vmem>>, vector<32x32xf32>
    %cst_9 = arith.constant dense<0.000000e+00> : vector<8x32xf32>
    %13 = tpu.matmul %11, %12, %cst_9 {dimension_numbers = #tpu.dot_dimension_numbers<[1], [0], [0], [1], [0, 0, 1, 1], [], []>} : vector<8x32xf32>, vector<32x32xf32>, vector<8x32xf32> -> vector<8x32xf32>
    %c0_10 = arith.constant 0 : index
    %c0_11 = arith.constant 0 : index
    %14 = vector.load %arg5[%c0_10, %c0_11] : memref<1x32xf32, #tpu.memory_space<vmem>>, vector<1x32xf32>
    %15 = vector.broadcast %14 : vector<1x32xf32> to vector<8x32xf32>
    %16 = arith.addf %13, %15 : vector<8x32xf32>
    %cst_12 = arith.constant 0.000000e+00 : f32
    %17 = vector.broadcast %cst_12 : f32 to vector<8x32xf32>
    %18 = arith.cmpf ogt, %16, %17 : vector<8x32xf32>
    %19 = math.exp %16 : vector<8x32xf32>
    %cst_13 = arith.constant 1.000000e+00 : f32
    %20 = vector.broadcast %cst_13 : f32 to vector<8x32xf32>
    %21 = arith.subf %19, %20 : vector<8x32xf32>
    %22 = arith.select %18, %16, %21 : vector<8x32xi1>, vector<8x32xf32>
    %c0_14 = arith.constant 0 : index
    %c0_15 = arith.constant 0 : index
    %23 = vector.load %arg6[%c0_14, %c0_15] : memref<32x4xf32, #tpu.memory_space<vmem>>, vector<32x4xf32>
    %cst_16 = arith.constant dense<0.000000e+00> : vector<8x4xf32>
    %24 = tpu.matmul %22, %23, %cst_16 {dimension_numbers = #tpu.dot_dimension_numbers<[1], [0], [0], [1], [0, 0, 1, 1], [], []>} : vector<8x32xf32>, vector<32x4xf32>, vector<8x4xf32> -> vector<8x4xf32>
    %c0_17 = arith.constant 0 : index
    %c0_18 = arith.constant 0 : index
    %25 = vector.load %arg7[%c0_17, %c0_18] : memref<1x4xf32, #tpu.memory_space<vmem>>, vector<1x4xf32>
    %26 = vector.broadcast %25 : vector<1x4xf32> to vector<8x4xf32>
    %27 = arith.addf %24, %26 : vector<8x4xf32>
    %28 = vector.extract_strided_slice %27 {offsets = [0, 0], sizes = [8, 2], strides = [1, 1]} : vector<8x4xf32> to vector<8x2xf32>
    %29 = vector.extract_strided_slice %27 {offsets = [0, 2], sizes = [8, 2], strides = [1, 1]} : vector<8x4xf32> to vector<8x2xf32>
    %cst_19 = arith.constant dense<0xFF800000> : vector<8xf32>
    %30 = vector.multi_reduction <maximumf>, %28, %cst_19 [1] : vector<8x2xf32> to vector<8xf32>
    %31 = vector.shape_cast %30 : vector<8xf32> to vector<8x1xf32>
    %32 = vector.broadcast %31 : vector<8x1xf32> to vector<8x2xf32>
    %33 = arith.subf %28, %32 : vector<8x2xf32>
    %34 = math.exp %33 : vector<8x2xf32>
    %cst_20 = arith.constant dense<0.000000e+00> : vector<8xf32>
    %35 = vector.multi_reduction <add>, %34, %cst_20 [1] : vector<8x2xf32> to vector<8xf32>
    %36 = vector.shape_cast %35 : vector<8xf32> to vector<8x1xf32>
    %37 = tpu.reciprocal %36 : vector<8x1xf32> -> vector<8x1xf32>
    %38 = vector.broadcast %37 : vector<8x1xf32> to vector<8x2xf32>
    %39 = arith.mulf %34, %38 : vector<8x2xf32>
    %40 = tpu.concatenate %39, %29 in 1 : vector<8x2xf32>, vector<8x2xf32> -> vector<8x4xf32>
    %c0_21 = arith.constant 0 : index
    %c0_22 = arith.constant 0 : index
    %41 = vector.load %arg8[%c0_21, %c0_22] : memref<8x4xf32, #tpu.memory_space<vmem>>, vector<8x4xf32>
    tpu.vector_store %arg8[%c0_21, %c0_22], %40 {strides = array<i32>} : memref<8x4xf32, #tpu.memory_space<vmem>>, vector<8x4xf32>,
    return
  }
  func.func @transform_0(%arg0: i32) -> (i32, i32) {
    %c0_i32 = arith.constant 0 : i32
    %c0_i32_0 = arith.constant 0 : i32
    return %arg0, %c0_i32 : i32, i32
  }
  func.func @transform_1(%arg0: i32) -> (i32, i32) {
    %c0_i32 = arith.constant 0 : i32
    %c0_i32_0 = arith.constant 0 : i32
    %c0_i32_1 = arith.constant 0 : i32
    return %c0_i32, %c0_i32_0 : i32, i32
  }
  func.func @transform_2(%arg0: i32) -> (i32, i32) {
    %c0_i32 = arith.constant 0 : i32
    %c0_i32_0 = arith.constant 0 : i32
    %c0_i32_1 = arith.constant 0 : i32
    return %c0_i32, %c0_i32_0 : i32, i32
  }
  func.func @transform_3(%arg0: i32) -> (i32, i32) {
    %c0_i32 = arith.constant 0 : i32
    %c0_i32_0 = arith.constant 0 : i32
    %c0_i32_1 = arith.constant 0 : i32
    return %c0_i32, %c0_i32_0 : i32, i32
  }
  func.func @transform_4(%arg0: i32) -> (i32, i32) {
    %c0_i32 = arith.constant 0 : i32
    %c0_i32_0 = arith.constant 0 : i32
    %c0_i32_1 = arith.constant 0 : i32
    return %c0_i32, %c0_i32_0 : i32, i32
  }
  func.func @transform_5(%arg0: i32) -> (i32, i32) {
    %c0_i32 = arith.constant 0 : i32
    %c0_i32_0 = arith.constant 0 : i32
    %c0_i32_1 = arith.constant 0 : i32
    return %c0_i32, %c0_i32_0 : i32, i32
  }
  func.func @transform_6(%arg0: i32) -> (i32, i32) {
    %c0_i32 = arith.constant 0 : i32
    %c0_i32_0 = arith.constant 0 : i32
    %c0_i32_1 = arith.constant 0 : i32
    return %c0_i32, %c0_i32_0 : i32, i32
  }
  func.func @transform_7(%arg0: i32) -> (i32, i32) {
    %c0_i32 = arith.constant 0 : i32
    %c0_i32_0 = arith.constant 0 : i32
    return %arg0, %c0_i32 : i32, i32
  }
}

</mosaic_0001>

<bundles_post_ra>
// kernel: tpu_custom_call.1
= control target key start
LH: loop header
LB: loop body
LE: loop exit
PB: predicated region body
PF: predicated region fallthrough
CT: control target
= control target key end

     0   :  { %vm39_vm0 = vcmask 1043456   ;;  %vm35_vm1 = vcmask 31744   ;;  %v368_v0 = vmov 0.0   ;;  %vm369_vm2 = vmmov 0   ;;  %s459_s1 = inlined_call_operand.vmem [shape: f32[4,32], index: 1, kind: input, shape index: {}]   ;;  %s460_s0 = inlined_call_operand.vmem [shape: f32[8,4], index: 0, kind: input, shape index: {}]   ;;  %s461_s3 = inlined_call_operand.vmem [shape: f32[32,32], index: 3, kind: input, shape index: {}]   ;;  %s462_s2 = inlined_call_operand.vmem [shape: f32[1,32], index: 2, kind: input, shape index: {}]   ;;  %s463_s5 = inlined_call_operand.vmem [shape: f32[32,4], index: 5, kind: input, shape index: {}]   ;;  %s464_s4 = inlined_call_operand.vmem [shape: f32[1,32], index: 4, kind: input, shape index: {}]   ;;  %s465_s6 = inlined_call_operand.vmem [shape: f32[1,4], index: 6, kind: input, shape index: {}]   ;;  %s466_s7 = inlined_call_operand.vmem [shape: f32[8,4], index: 7, kind: output, shape index: {}]  }
   0x1   :  { %331 = vmatprep.subr.mxu0 %v368_v0  ;;  %v27_v1 = vld [vmem:[%s459_s1] sm:$0xf]  ;;  %333 = vmatprep.mubr.msk.f32.mxu0 %vm369_vm2, %v368_v0  ;;  %v121_v3 = vld [vmem:[%s461_s3 + $0x18] sm:$0xff]  ;;  %v120_v4 = vld [vmem:[%s461_s3 + $0x10] sm:$0xff]  ;;  %vm129_vm3 = vcmask 261120   ;;  %vm292_vm6 = vcmask 15360  }
   0x2   :  { %v26_v2 = vld [vmem:[%s460_s0] sm:$0xff]  ;;  %332 = vmatpush3.msk.msra.mxu0 %vm39_vm0, %v27_v1  ;;  %336 = vmatprep.subr.mxu1 %v368_v0  ;;  %v119_v5 = vld [vmem:[%s461_s3 + $0x8] sm:$0xff]  ;;  %v211_v15 = vld [vmem:[%s463_s5 + $0x18] sm:$0xff] }
   0x3   :  { %334 = vmatmul.mubr.msk.f32.vlgmr.msra.gmra.mxu0 %vm35_vm1, %v26_v2  ;;  %344 = vmatprep.mubr.msk.f32.mxu1 %vm369_vm2, %v368_v0  ;;  %v118_v6 = vld [vmem:[%s461_s3] sm:$0xff]  ;;  %v210_v16 = vld [vmem:[%s463_s5 + $0x10] sm:$0xff]  ;;  %v209_v17 = vld [vmem:[%s463_s5 + $0x8] sm:$0xff] }
   0x4   :  { %347 = vmatprep.subr.mxu0 %v368_v0  ;;  %355 = vmatprep.mubr.msk.f32.mxu0 %vm369_vm2, %v368_v0  ;;  %v310_v7 = vld [vmem:[%s462_s2] ss:$0 sm:$0xff] }
   0x5   :  { %337 = vmatpush3.msra.mxu1 %v121_v3  ;;  %348 = vmatpush3.msra.mxu0 %v211_v15  ;;  %v208_v18 = vld [vmem:[%s463_s5] sm:$0xff] }
   0x6   :  { %338 = vmatprep.subr.mxu1 %v368_v0  ;;  %349 = vmatprep.subr.mxu0 %v368_v0  ;;  %v314_v19 = vld [vmem:[%s464_s4] ss:$0 sm:$0xff] }
   0x7   :  { %339 = vmatpush3.msra.mxu1 %v120_v4  ;;  %350 = vmatpush3.msra.mxu0 %v210_v16  ;;  %v317_v27 = vld [vmem:[%s465_s6] ss:$0 sm:$0xff] }
   0x8   :  { %340 = vmatprep.subr.mxu1 %v368_v0  ;;  %351 = vmatprep.subr.mxu0 %v368_v0 }
   0x9   :  { %341 = vmatpush3.msra.mxu1 %v119_v5  ;;  %352 = vmatpush3.msra.mxu0 %v209_v17 }
   0xa   :  { %342 = vmatprep.subr.mxu1 %v368_v0  ;;  %353 = vmatprep.subr.mxu0 %v368_v0 }
   0xb   :  { %343 = vmatpush3.msra.mxu1 %v118_v6  ;;  %354 = vmatpush3.msra.mxu0 %v208_v18 }
  0xc3   :  { %v109_v8 = vpop.f32.mrf.mxu0 }
  0xc4   :  { %v110_v9 = vadd.f32 %v310_v7, %v109_v8 }
  0xc5   :  { %v335_v10 = vpop.f32.mrf.mxu0 }
  0xc6   :  { %v114_v11 = vmul.f32 1.442695, %v110_v9  ;;  %vm113_vm4 = vcmp.gt.f32.partialorder %v110_v9, 0.0 }
  0xc8   :  { %360 = vpow2.f32 %v114_v11 }
  0xd5   :  { %v361_v12 = vpop.eup %360 }
  0xd6   :  { %v313_v13 = vadd.f32 -1.0, %v361_v12 }
  0xd8   :  { %v117_v14 = vsel %vm113_vm4, %v110_v9, %v313_v13 }
  0xd9   :  { %345 = vmatmul.mubr.msk.f32.vlgmr.msra.gmra.mxu1 %vm129_vm3, %v117_v14 }
 0x199   :  { %v199_v20 = vpop.f32.mrf.mxu1 }
 0x19a   :  { %v200_v21 = vadd.f32 %v314_v19, %v199_v20 }
 0x19b   :  { %v346_v22 = vpop.f32.mrf.mxu1 }
 0x19c   :  { %v204_v23 = vmul.f32 1.442695, %v200_v21  ;;  %vm203_vm5 = vcmp.gt.f32.partialorder %v200_v21, 0.0 }
 0x19e   :  { %362 = vpow2.f32 %v204_v23 }
 0x1ab   :  { %v363_v24 = vpop.eup %362 }
 0x1ac   :  { %v316_v25 = vadd.f32 -1.0, %v363_v24 }
 0x1ae   :  { %v207_v26 = vsel %vm203_vm5, %v200_v21, %v316_v25 }
 0x1af   :  { %356 = vmatmul.mubr.msk.f32.vlgmr.msra.gmra.mxu0 %vm129_vm3, %v207_v26 }
 0x26f   :  { %v288_v28 = vpop.f32.mrf.mxu0 }
 0x270   :  { %v289_v29 = vadd.f32 %v317_v27, %v288_v28 }
 0x271   :  { %v357_v30 = vpop.f32.mrf.mxu0 }
 0x272   :  { %v293_v31 = vsel %vm292_vm6, %v289_v29, -inf }
 0x273   :  { %294 = vmax.xlane.f32.xlu0 %v293_v31 }
 0x2fc   :  { %v295_v32 = vpop.xlane.xlu0 %294 }
 0x2fd   :  { %v296_v33 = vsub.f32 %v289_v29, %v295_v32 }
 0x2ff   :  { %v297_v34 = vmul.f32 1.442695, %v296_v33 }
 0x301   :  { %364 = vpow2.f32 %v297_v34 }
 0x30e   :  { %v365_v35 = vpop.eup %364 }
 0x30f   :  { %v299_v36 = vsel %vm292_vm6, %v365_v35, 0.0 }
 0x310   :  { %300 = vadd.xlane.f32.xlu0 %v299_v36 }
 0x399   :  { %v301_v37 = vpop.xlane.xlu0 %300 }
 0x39a   :  { %366 = vrcp.f32 %v301_v37 }
 0x3a7   :  { %v367_v38 = vpop.eup %366 }
 0x3a8   :  { %v303_v39 = vmul.f32 %v367_v38, %v365_v35 }
 0x3aa   :  { %v304_v40 = vsel %vm292_vm6, %v303_v39, %v289_v29 }
 0x3ab   :  { %305 = vst.msk [vmem:[%s466_s7] sm:$0xff] %vm35_vm1, %v304_v40 }

</bundles_post_ra>
